<compile_context>
chip_gen: v7x
topology: tpu7x:2x2x1
jax: 0.10.0
libtpu: 0.0.40
codegen_flags: <defaults>
</compile_context>

<pallas_src>
import jax
import jax.numpy as jnp
from jax.experimental import pallas as pl
from jax.experimental.pallas import tpu as pltpu


_LANES = 128          # lane width of the output view
_TILE_ROWS = 2048     # view-rows per grid step (= 262,144 batch rows, ~3 MiB/step)


def _pad_up(n, m):
    return ((n + m - 1) // m) * m


def _linear_kernel(x_ref, w_ref, b_ref, o_ref):
    """o[m, j] = w0 * x[m, 2j] + w1 * x[m, 2j+1] + b   (lane-interleaved input).

    x_ref: (TM, K*128) VMEM   w_ref: (K,) SMEM   b_ref: (1,) SMEM   o_ref: (TM, 128) VMEM
    """
    lanes = o_ref.shape[-1]                 # 128
    kdim = x_ref.shape[-1] // lanes         # 2 (static)

    # Structured weight matrix W[c, j] = w[c % K] if c == K*j + (c % K) else 0.
    # Built from SMEM scalars every step (cheap, and safe under "parallel"
    # grid sharding across TensorCores).
    rows = jax.lax.broadcasted_iota(jnp.int32, (kdim * lanes, lanes), 0)
    cols = jax.lax.broadcasted_iota(jnp.int32, (kdim * lanes, lanes), 1)
    w_big = jnp.zeros((kdim * lanes, lanes), jnp.float32)
    for k in range(kdim):                   # kdim == 2: fully unrolled
        w_big = jnp.where(rows == kdim * cols + k, w_ref[k], w_big)

    acc = jnp.dot(
        x_ref[...], w_big,
        preferred_element_type=jnp.float32,
        precision=jax.lax.Precision.HIGHEST,   # full f32 accuracy on the MXU
    )
    o_ref[...] = acc + b_ref[0]


def linear_pallas(x, weight, bias, *, tile_rows=_TILE_ROWS):
    """y = x @ weight.T + bias via a Pallas TPU kernel.

    x: [B, 2] f32, weight: [1, 2] f32 (PyTorch nn.Linear layout), bias: [1] f32.
    Returns [B, 1] f32.
    """
    x = jnp.asarray(x, jnp.float32)
    B, K = x.shape
    N = weight.shape[0]
    assert N == 1 and weight.shape[1] == K, "Model uses Linear(2 -> 1)"

    w = jnp.asarray(weight, jnp.float32).reshape(K)
    b = jnp.asarray(bias, jnp.float32).reshape(N)

    # Zero-copy lane-dense view: (B, K) -> (R, K*128).  Requires B % 128 == 0;
    # otherwise pad (only the ragged-B case pays the extra pass).  Also pad tiny
    # batches up to 8 view-rows so the matmul M-dim is a full sublane tile.
    B_pad = max(_pad_up(B, _LANES), 8 * _LANES)
    if B_pad != B:
        x = jnp.pad(x, ((0, B_pad - B), (0, 0)))
    R = B_pad // _LANES
    x_view = x.reshape(R, K * _LANES)       # free reshape (row-major contiguous)

    tm = min(tile_rows, R)                  # tm == R (full) or a multiple of 8
    grid = (pl.cdiv(R, tm),)                # ragged last block handled by Pallas

    bytes_accessed = 4 * (R * K * _LANES + R * _LANES + K + N)
    flops = 2 * R * (K * _LANES) * _LANES   # actual MXU work (structured matmul)

    y_view = pl.pallas_call(
        _linear_kernel,
        out_shape=jax.ShapeDtypeStruct((R, _LANES), jnp.float32),
        grid=grid,
        in_specs=[
            pl.BlockSpec((tm, K * _LANES), lambda i: (i, 0)),
            pl.BlockSpec(memory_space=pltpu.MemorySpace.SMEM),
            pl.BlockSpec(memory_space=pltpu.MemorySpace.SMEM),
        ],
        out_specs=pl.BlockSpec((tm, _LANES), lambda i: (i, 0)),
        compiler_params=pltpu.CompilerParams(
            dimension_semantics=("parallel",),      # lets v7x's 2 TCs split steps
            vmem_limit_bytes=32 * 1024 * 1024,
        ),
        cost_estimate=pl.CostEstimate(
            flops=flops, transcendentals=0, bytes_accessed=bytes_accessed),
    )(x_view, w, b)

    # (R, 128) -> (B_pad, 1): same row-major order, no data movement.
    y = y_view.reshape(B_pad, N)
    return y if B_pad == B else y[:B]


def model_forward(x, weight, bias):
    """Equivalent to Model.forward(X) -> logits of shape [B, 1]."""
    return linear_pallas(x, weight, bias)


def model_predict(x_single, weight, bias):
    """Equivalent to Model.predict(x).

    Single-example predict is pure launch overhead, so it skips pallas_call and
    uses sigmoid(z) >= 0.5  <=>  z >= 0 (no transcendental, no extra HBM pass).
    Returns int32 0/1 per row.
    # TODO(synk): PyTorch's predict returns a Python int; we return an int32 array.
    """
    x = jnp.asarray(x_single, jnp.float32).reshape(-1, 2)
    w = jnp.asarray(weight, jnp.float32).reshape(2)
    b = jnp.asarray(bias, jnp.float32).reshape(())
    logit = x[:, 0:1] * w[0] + x[:, 1:2] * w[1] + b
    return (logit >= 0.0).astype(jnp.int32)


if __name__ == "__main__":
    key = jax.random.PRNGKey(0)
    k_w, k_b, k_x, k_x2, k_x3, k_x4 = jax.random.split(key, 6)

    # Deterministic parameters matching nn.Linear(2, 1): weight [1, 2], bias [1].
    in_features, out_features = 2, 1
    bound = 1.0 / jnp.sqrt(in_features)
    weight = jax.random.uniform(
        k_w, (out_features, in_features), jnp.float32, -bound, bound
    )
    bias = jax.random.uniform(k_b, (out_features,), jnp.float32, -bound, bound)

    def ref_fn(xv):  # exact f32 elementwise reference
        return xv[:, 0:1] * weight[0, 0] + xv[:, 1:2] * weight[0, 1] + bias[0]

    # 1) Tiny batch (padded to one full 8x128 view block).
    x = jax.random.normal(k_x, (8, in_features), jnp.float32)
    y = jax.block_until_ready(model_forward(x, weight, bias))
    assert y.shape == (8, out_features)
    assert jnp.allclose(y, ref_fn(x), atol=1e-5), "tiny-batch mismatch"

    # 2) Batch that is a multiple of 128 (zero-copy view, single grid step).
    x2 = jax.random.normal(k_x2, (4096, in_features), jnp.float32)
    y2 = jax.block_until_ready(model_forward(x2, weight, bias))
    assert jnp.allclose(y2, ref_fn(x2), atol=1e-5), "mid-batch mismatch"

    # 3) Multi-step cdiv grid with a ragged last block (small tile override).
    x3 = jax.random.normal(k_x3, (5120, in_features), jnp.float32)  # R=40, tm=16
    y3 = jax.block_until_ready(linear_pallas(x3, weight, bias, tile_rows=16))
    assert jnp.allclose(y3, ref_fn(x3), atol=1e-5), "ragged-grid mismatch"

    # 4) Ragged batch size (pad path).
    x4 = jax.random.normal(k_x4, (200, in_features), jnp.float32)
    y4 = jax.block_until_ready(model_forward(x4, weight, bias))
    assert y4.shape == (200, out_features)
    assert jnp.allclose(y4, ref_fn(x4), atol=1e-5), "ragged-batch mismatch"

    # 5) predict() on a single example (no Pallas, no sigmoid).
    pred = jax.block_until_ready(model_predict(x[:1], weight, bias))
    assert pred.shape == (1, 1) and int(pred[0, 0]) in (0, 1)
    assert int(pred[0, 0]) == int(ref_fn(x[:1])[0, 0] >= 0.0)

    print("KERNEL_OK")
</pallas_src>

<mosaic_0001>
module attributes {stable_mosaic.version = 11 : i64} {
  func.func @_linear_kernel(%arg0: i32, %arg1: memref<8x256xf32, #tpu.memory_space<vmem>>, %arg2: memref<2xf32, #tpu.memory_space<smem>>, %arg3: memref<1xf32, #tpu.memory_space<smem>>, %arg4: memref<8x128xf32, #tpu.memory_space<vmem>>) attributes {dimension_semantics = [#tpu.dimension_semantics<parallel>], iteration_bounds = array<i64: 1>, scalar_prefetch = 0 : i64, scratch_operands = 0 : i64, tpu.core_type = #tpu.core_type<tc>, window_params = [{transform_indices = @transform_0, window_bounds = array<i64: 8, 256>}, {transform_indices = @transform_1, window_bounds = array<i64: 2>}, {transform_indices = @transform_2, window_bounds = array<i64: 1>}, {transform_indices = @transform_3, window_bounds = array<i64: 8, 128>}]} {
    %0 = tpu.iota {dimensions = array<i32: 0>} : vector<256x128xi32>
    %1 = tpu.iota {dimensions = array<i32: 1>} : vector<256x128xi32>
    %cst = arith.constant 0.000000e+00 : f32
    %2 = vector.broadcast %cst : f32 to vector<256x128xf32>
    %c2_i32 = arith.constant 2 : i32
    %3 = vector.broadcast %c2_i32 : i32 to vector<256x128xi32>
    %4 = arith.muli %3, %1 : vector<256x128xi32>
    %c0_i32 = arith.constant 0 : i32
    %5 = vector.broadcast %c0_i32 : i32 to vector<256x128xi32>
    %6 = arith.addi %4, %5 : vector<256x128xi32>
    %7 = arith.cmpi eq, %0, %6 : vector<256x128xi32>
    %c0 = arith.constant 0 : index
    %8 = memref.load %arg2[%c0] : memref<2xf32, #tpu.memory_space<smem>>
    %9 = vector.broadcast %8 : f32 to vector<256x128xf32>
    %10 = arith.select %7, %9, %2 : vector<256x128xi1>, vector<256x128xf32>
    %c2_i32_0 = arith.constant 2 : i32
    %11 = vector.broadcast %c2_i32_0 : i32 to vector<256x128xi32>
    %12 = arith.muli %11, %1 : vector<256x128xi32>
    %c1_i32 = arith.constant 1 : i32
    %13 = vector.broadcast %c1_i32 : i32 to vector<256x128xi32>
    %14 = arith.addi %12, %13 : vector<256x128xi32>
    %15 = arith.cmpi eq, %0, %14 : vector<256x128xi32>
    %c1 = arith.constant 1 : index
    %16 = memref.load %arg2[%c1] : memref<2xf32, #tpu.memory_space<smem>>
    %17 = vector.broadcast %16 : f32 to vector<256x128xf32>
    %18 = arith.select %15, %17, %10 : vector<256x128xi1>, vector<256x128xf32>
    %c0_1 = arith.constant 0 : index
    %c0_2 = arith.constant 0 : index
    %19 = vector.load %arg1[%c0_1, %c0_2] : memref<8x256xf32, #tpu.memory_space<vmem>>, vector<8x256xf32>
    %cst_3 = arith.constant dense<0.000000e+00> : vector<8x128xf32>
    %20 = tpu.matmul %19, %18, %cst_3 {dimension_numbers = #tpu.dot_dimension_numbers<[1], [0], [0], [1], [0, 0, 1, 1], [], []>, precision = #tpu.contract_precision<fp32>} : vector<8x256xf32>, vector<256x128xf32>, vector<8x128xf32> -> vector<8x128xf32>
    %c0_4 = arith.constant 0 : index
    %21 = memref.load %arg3[%c0_4] : memref<1xf32, #tpu.memory_space<smem>>
    %22 = vector.broadcast %21 : f32 to vector<8x128xf32>
    %23 = arith.addf %20, %22 : vector<8x128xf32>
    %c0_5 = arith.constant 0 : index
    %c0_6 = arith.constant 0 : index
    %24 = vector.load %arg4[%c0_5, %c0_6] : memref<8x128xf32, #tpu.memory_space<vmem>>, vector<8x128xf32>
    tpu.vector_store %arg4[%c0_5, %c0_6], %23 {strides = array<i32>} : memref<8x128xf32, #tpu.memory_space<vmem>>, vector<8x128xf32>,
    return
  }
  func.func @transform_0(%arg0: i32) -> (i32, i32) {
    %c0_i32 = arith.constant 0 : i32
    %c0_i32_0 = arith.constant 0 : i32
    return %arg0, %c0_i32 : i32, i32
  }
  func.func @transform_1(%arg0: i32) -> i32 {
    %c0_i32 = arith.constant 0 : i32
    %c0_i32_0 = arith.constant 0 : i32
    return %c0_i32 : i32
  }
  func.func @transform_2(%arg0: i32) -> i32 {
    %c0_i32 = arith.constant 0 : i32
    %c0_i32_0 = arith.constant 0 : i32
    return %c0_i32 : i32
  }
  func.func @transform_3(%arg0: i32) -> (i32, i32) {
    %c0_i32 = arith.constant 0 : i32
    %c0_i32_0 = arith.constant 0 : i32
    return %arg0, %c0_i32 : i32, i32
  }
}

</mosaic_0001>

<bundles_post_ra>
// kernel: tpu_custom_call.1
= control target key start
LH: loop header
LB: loop body
LE: loop exit
PB: predicated region body
PF: predicated region fallthrough
CT: control target
= control target key end

     0   :  { %9 = vsyncpa [#allocation4], 0  ;;  %s2184_s0 = inlined_call_operand.hbm [shape: f32[8,256], index: 0, kind: input, shape index: {}]   ;;  %s2185_s1 = inlined_call_operand.vmem [shape: f32[2], index: 1, kind: input, shape index: {}]   ;;  %s2186_s2 = inlined_call_operand.<no memory space> [shape: f32[1], index: 2, kind: input, shape index: {}]   ;;  %s2187_s3 = inlined_call_operand.hbm [shape: f32[8,128], index: 3, kind: output, shape index: {}]  }
   0x1   :  { %10 = vsyncpa [#allocation6], 0 }
   0x2   :  { %11 = vsyncpa [#allocation5], 0  ;;  %s28_s14 = sshll.u32 %s2185_s1, 4  ;;  %s1561_s15 = smov [#allocation3]   ;;  %s29_s14 = int_to_ptr.vmem [resolvable:$true] %s28_s14 }
   0x3   :  { %s18_s16 = sshll.u32 %s1561_s15, 4  ;;  %s1499_s19 = scalar_lea.hbm %s2184_s0, 256  ;;  %s19_s16 = int_to_ptr.vmem [resolvable:$true] %s18_s16 }
   0x4   :  { %p1500_p0 = scmp.ne.s32.totalorder %s2184_s0, %s1499_s19  ;;  %p1503_p1 = scmp.lt.u32.totalorder %s1499_s19, %s2184_s0 }
   0x6   :  { %p1505_p2 = pnand %p1503_p1, %p1500_p0 }
   0x8   :  { %1508 = shalt.err (!%p1505_p2)
}
   0x9   :  { %s1509_s24 = scalar_lea.vmem %s19_s16, 256  ;;  %p1514_p4 = scmp.lt.s32.totalorder %s19_s16, %s19_s16 }
   0xa   :  { %p1510_p3 = scmp.ne.s32.totalorder %s19_s16, %s1509_s24  ;;  %p1515_p5 = scmp.lt.s32.totalorder %s1509_s24, %s1509_s24 }
   0xc   :  { %p1516_p6 = por %p1515_p5, %p1514_p4 }
   0xe   :  { %p1517_p7 = pnand %p1516_p6, %p1510_p3 }
  0x10   :  { %1520 = shalt.err (!%p1517_p7)
}
  0x11   :  { %21 = dma.hbm_to_vmem [thread:$0]  %s2184_s0, 256, %s19_s16, [#allocation4]  }
  0x12   :  { %s1521_s26 = scalar_lea.vmem %s29_s14, 16  ;;  %p1526_p9 = scmp.lt.s32.totalorder %s29_s14, %s29_s14 }
  0x13   :  { %p1522_p8 = scmp.ne.s32.totalorder %s29_s14, %s1521_s26  ;;  %p1527_p10 = scmp.lt.s32.totalorder %s1521_s26, %s1521_s26 }
  0x15   :  { %p1528_p11 = por %p1527_p10, %p1526_p9 }
  0x17   :  { %p1529_p12 = pnand %p1528_p11, %p1522_p8 }
  0x19   :  { %1532 = shalt.err (!%p1529_p12)
}
  0x1a   :  { %s1562_s27 = smov [#allocation7]  }
  0x1b   :  { %31 = dma.vmem_to_smem %s29_s14, 16, %s1562_s27, [#allocation6]  }
  0x1c   :  { %1555 = dma.done.wait [#allocation4], 256  }
  0x1d   :  { %1556 = vsyncadd [#allocation4], 4294967040 }
  0x1e   :  { %1557 = dma.done.wait [#allocation6], 16  }
  0x1f   :  { %1558 = vsyncadd [#allocation6], 4294967280 }
  0x20   :  { %40 = sfence }
  0x21   :  { %v41_v0 = vlaneseq  ;;  %s109_s28 = sld [smem:[#allocation7]]  ;;  %s1093_s29 = sld [smem:[#allocation7 + $0x1]]  ;;  %v211_v1 = vld [vmem:[#allocation3 + $0x8] sm:$0xff]  ;;  %v210_v2 = vld [vmem:[#allocation3] sm:$0xff] }
  0x22   :  { %v1599_v3 = vand.u32 4294901760, %v211_v1  ;;  %v1601_v4 = vand.u32 4294901760, %v210_v2 }
  0x23   :  { %v1603_v5 = vshrl.u32 %v41_v0, 7  ;;  %v75_v6 = vand.u32 127, %v41_v0 }
  0x24   :  { %2231 = vst [vmem:[#allocation12_spill] sm:$0xff] %v1599_v3  ;;  %v1606_v7 = vsub.f32 %v211_v1, %v1599_v3  ;;  %v1609_v8 = vsub.f32 %v210_v2, %v1601_v4  ;;  %551 = vmatprep.mubr.f32.mxu1 %v1599_v3 }
  0x25   :  { %v58_v9 = vadd.s32 128, %v1603_v5  ;;  %v59_v10 = vadd.s32 136, %v1603_v5  ;;  %v1614_v11 = vmul.u32 2, %v75_v6  ;;  %v43_v12 = vadd.s32 8, %v1603_v5 }
  0x26   :  { %v60_v13 = vadd.s32 144, %v1603_v5  ;;  %v61_v14 = vadd.s32 152, %v1603_v5  ;;  %v44_v15 = vadd.s32 16, %v1603_v5  ;;  %v45_v16 = vadd.s32 24, %v1603_v5 }
  0x27   :  { %vm93_vm0 = vcmp.eq.s32.totalorder %v58_v9, %v1614_v11  ;;  %vm94_vm1 = vcmp.eq.s32.totalorder %v59_v10, %v1614_v11  ;;  %v1623_v17 = vstv %s109_s28  ;;  %v1626_v18 = vadd.s32 1, %v1614_v11 }
  0x28   :  { %v127_v19 = vsel %vm93_vm0, %v1623_v17, 0.0  ;;  %v128_v20 = vsel %vm94_vm1, %v1623_v17, 0.0  ;;  %v1630_v21 = vstv %s1093_s29  ;;  %vm77_vm2 = vcmp.eq.s32.totalorder %v1603_v5, %v1614_v11 }
  0x29   :  { %vm160_vm3 = vcmp.eq.s32.totalorder %v58_v9, %v1626_v18  ;;  %vm161_vm4 = vcmp.eq.s32.totalorder %v59_v10, %v1626_v18  ;;  %vm78_vm5 = vcmp.eq.s32.totalorder %v43_v12, %v1614_v11  ;;  %v111_v22 = vsel %vm77_vm2, %v1623_v17, 0.0 }
  0x2a   :  { %v194_v23 = vsel %vm160_vm3, %v1630_v21, %v127_v19  ;;  %v195_v24 = vsel %vm161_vm4, %v1630_v21, %v128_v20  ;;  %v112_v25 = vsel %vm78_vm5, %v1623_v17, 0.0  ;;  %vm144_vm6 = vcmp.eq.s32.totalorder %v1603_v5, %v1626_v18 }
  0x2b   :  { %v263_v26 = vand.u32 4294901760, %v194_v23  ;;  %v266_v27 = vand.u32 4294901760, %v195_v24  ;;  %vm145_vm7 = vcmp.eq.s32.totalorder %v43_v12, %v1626_v18  ;;  %v178_v28 = vsel %vm144_vm6, %v1630_v21, %v111_v22 }
  0x2c   :  { %v179_v29 = vsel %vm145_vm7, %v1630_v21, %v112_v25  ;;  %v215_v30 = vand.u32 4294901760, %v178_v28  ;;  %vm95_vm8 = vcmp.eq.s32.totalorder %v60_v13, %v1614_v11  ;;  %vm96_vm9 = vcmp.eq.s32.totalorder %v61_v14, %v1614_v11 }
  0x2d   :  { %v1648_v31 = vpack.c.bf16 %v266_v27, %v263_v26  ;;  %v218_v32 = vand.u32 4294901760, %v179_v29  ;;  %v129_v33 = vsel %vm95_vm8, %v1623_v17, 0.0  ;;  %v130_v34 = vsel %vm96_vm9, %v1623_v17, 0.0 }
  0x2e   :  { %v1652_v35 = vsub.f32 %v178_v28, %v215_v30  ;;  %vm162_vm10 = vcmp.eq.s32.totalorder %v60_v13, %v1626_v18  ;;  %vm163_vm11 = vcmp.eq.s32.totalorder %v61_v14, %v1626_v18  ;;  %vm79_vm12 = vcmp.eq.s32.totalorder %v44_v15, %v1614_v11 }
  0x2f   :  { %1305 = vmatprep.subr.bf16.mxu0 %v1648_v31  ;;  %v1658_v36 = vpack.c.bf16 %v218_v32, %v215_v30  ;;  %v1660_v37 = vsub.f32 %v179_v29, %v218_v32  ;;  %v196_v38 = vsel %vm162_vm10, %v1630_v21, %v129_v33  ;;  %v197_v39 = vsel %vm163_vm11, %v1630_v21, %v130_v34 }
  0x30   :  { %v269_v40 = vand.u32 4294901760, %v196_v38  ;;  %v272_v41 = vand.u32 4294901760, %v197_v39  ;;  %vm80_vm13 = vcmp.eq.s32.totalorder %v45_v16, %v1614_v11  ;;  %v113_v42 = vsel %vm79_vm12, %v1623_v17, 0.0 }
  0x31   :  { %1307 = vmatpush3.bf16.msra.mxu0 %v1658_v36  ;;  %v114_v43 = vsel %vm80_vm13, %v1623_v17, 0.0  ;;  %vm146_vm14 = vcmp.eq.s32.totalorder %v44_v15, %v1626_v18  ;;  %vm147_vm15 = vcmp.eq.s32.totalorder %v45_v16, %v1626_v18  ;;  %v62_v44 = vadd.s32 160, %v1603_v5 }
  0x32   :  { %v1671_v45 = vpack.c.bf16 %v272_v41, %v269_v40  ;;  %v1673_v46 = vsub.f32 %v196_v38, %v269_v40  ;;  %v1675_v47 = vsub.f32 %v197_v39, %v272_v41  ;;  %v180_v48 = vsel %vm146_vm14, %v1630_v21, %v113_v42 }
  0x33   :  { %v181_v49 = vsel %vm147_vm15, %v1630_v21, %v114_v43  ;;  %v221_v50 = vand.u32 4294901760, %v180_v48  ;;  %v63_v51 = vadd.s32 168, %v1603_v5  ;;  %vm97_vm0 = vcmp.eq.s32.totalorder %v62_v44, %v1614_v11 }
  0x34   :  { %1309 = vmatprep.subr.bf16.mxu0 %v1671_v45  ;;  %v224_v52 = vand.u32 4294901760, %v181_v49  ;;  %v131_v53 = vsel %vm97_vm0, %v1623_v17, 0.0  ;;  %vm164_vm1 = vcmp.eq.s32.totalorder %v62_v44, %v1626_v18  ;;  %v1684_v54 = vsub.f32 %v194_v23, %v263_v26 }
  0x35   :  { %v1686_v55 = vsub.f32 %v180_v48, %v221_v50  ;;  %vm98_vm2 = vcmp.eq.s32.totalorder %v63_v51, %v1614_v11  ;;  %vm165_vm3 = vcmp.eq.s32.totalorder %v63_v51, %v1626_v18  ;;  %v198_v56 = vsel %vm164_vm1, %v1630_v21, %v131_v53 }
  0x36   :  { %v1691_v57 = vpack.c.bf16 %v224_v52, %v221_v50  ;;  %v1693_v58 = vsub.f32 %v181_v49, %v224_v52  ;;  %v132_v59 = vsel %vm98_vm2, %v1623_v17, 0.0  ;;  %v275_v60 = vand.u32 4294901760, %v198_v56 }
  0x37   :  { %v199_v61 = vsel %vm165_vm3, %v1630_v21, %v132_v59  ;;  %v2193_v62 = vand.u32 4294901760, %v1684_v54  ;;  %v1698_v63 = vsub.f32 %v195_v24, %v266_v27  ;;  %v46_v0 = vadd.s32 32, %v1603_v5 }
  0x38   :  { %1311 = vmatpush3.bf16.msra.mxu0 %v1691_v57  ;;  %v278_v1 = vand.u32 4294901760, %v199_v61  ;;  %v1702_v2 = vsub.f32 %v198_v56, %v275_v60  ;;  %v47_v6 = vadd.s32 40, %v1603_v5  ;;  %v2191_v9 = vand.u32 4294901760, %v1652_v35 }
  0x39   :  { %v442_v10 = vsub.f32 %v1684_v54, %v2193_v62  ;;  %v2192_v12 = vand.u32 4294901760, %v1698_v63  ;;  %vm81_vm4 = vcmp.eq.s32.totalorder %v46_v0, %v1614_v11  ;;  %vm148_vm5 = vcmp.eq.s32.totalorder %v46_v0, %v1626_v18 }
  0x3a   :  { %v1712_v13 = vpack.c.bf16 %v278_v1, %v275_v60  ;;  %v1714_v14 = vsub.f32 %v199_v61, %v278_v1  ;;  %vm82_vm6 = vcmp.eq.s32.totalorder %v47_v6, %v1614_v11  ;;  %v115_v15 = vsel %vm81_vm4, %v1623_v17, 0.0 }
  0x3b   :  { %v443_v16 = vand.u32 4294901760, %v442_v10  ;;  %v449_v19 = vsub.f32 %v1698_v63, %v2192_v12  ;;  %v116_v20 = vsel %vm82_vm6, %v1623_v17, 0.0  ;;  %vm149_vm7 = vcmp.eq.s32.totalorder %v47_v6, %v1626_v18 }
  0x3c   :  { %1313 = vmatprep.subr.bf16.mxu0 %v1712_v13  ;;  %v182_v22 = vsel %vm148_vm5, %v1630_v21, %v115_v15  ;;  %v183_v23 = vsel %vm149_vm7, %v1630_v21, %v116_v20  ;;  %v330_v24 = vsub.f32 %v1652_v35, %v2191_v9  ;;  %v2190_v25 = vand.u32 4294901760, %v1660_v37 }
  0x3d   :  { %v450_v26 = vand.u32 4294901760, %v449_v19  ;;  %v227_v27 = vand.u32 4294901760, %v182_v22  ;;  %v230_v28 = vand.u32 4294901760, %v183_v23  ;;  %v64_v29 = vadd.s32 176, %v1603_v5 }
  0x3e   :  { %v331_v30 = vand.u32 4294901760, %v330_v24  ;;  %v337_v32 = vsub.f32 %v1660_v37, %v2190_v25  ;;  %v65_v33 = vadd.s32 184, %v1603_v5  ;;  %v2189_v34 = vand.u32 4294901760, %v1673_v46 }
  0x3f   :  { %v1336_v38 = vpack.c.bf16 %v450_v26, %v443_v16  ;;  %v1736_v39 = vpack.c.bf16 %v230_v28, %v227_v27  ;;  %v1738_v40 = vsub.f32 %v182_v22, %v227_v27  ;;  %v1740_v41 = vsub.f32 %v183_v23, %v230_v28 }
  0x40   :  { %v338_v42 = vand.u32 4294901760, %v337_v32  ;;  %vm99_vm8 = vcmp.eq.s32.totalorder %v64_v29, %v1614_v11  ;;  %vm100_vm9 = vcmp.eq.s32.totalorder %v65_v33, %v1614_v11  ;;  %vm166_vm10 = vcmp.eq.s32.totalorder %v64_v29, %v1626_v18 }
  0x41   :  { %1337 = vmatprep.subr.bf16.mxu1 %v1336_v38  ;;  %1315 = vmatpush3.bf16.msra.mxu0 %v1736_v39  ;;  %v133_v43 = vsel %vm99_vm8, %v1623_v17, 0.0  ;;  %v134_v44 = vsel %vm100_vm9, %v1623_v17, 0.0  ;;  %vm167_vm11 = vcmp.eq.s32.totalorder %v65_v33, %v1626_v18  ;;  %v456_v48 = vsub.f32 %v1673_v46, %v2189_v34 }
  0x42   :  { %v1338_v49 = vpack.c.bf16 %v338_v42, %v331_v30  ;;  %v200_v50 = vsel %vm166_vm10, %v1630_v21, %v133_v43  ;;  %v201_v51 = vsel %vm167_vm11, %v1630_v21, %v134_v44  ;;  %v2188_v52 = vand.u32 4294901760, %v1675_v47 }
  0x43   :  { %v281_v53 = vand.u32 4294901760, %v200_v50  ;;  %v284_v56 = vand.u32 4294901760, %v201_v51  ;;  %v457_v59 = vand.u32 4294901760, %v456_v48  ;;  %v48_v60 = vadd.s32 48, %v1603_v5 }
  0x44   :  { %1339 = vmatpush3.bf16.msra.mxu1 %v1338_v49  ;;  %v463_v61 = vsub.f32 %v1675_v47, %v2188_v52  ;;  %v49_v0 = vadd.s32 56, %v1603_v5  ;;  %v2205_v1 = vand.u32 4294901760, %v1686_v55  ;;  %v2204_v6 = vand.u32 4294901760, %v1693_v58 }
  0x45   :  { %v1762_v10 = vpack.c.bf16 %v284_v56, %v281_v53  ;;  %v1764_v15 = vsub.f32 %v200_v50, %v281_v53  ;;  %v1766_v16 = vsub.f32 %v201_v51, %v284_v56  ;;  %vm83_vm12 = vcmp.eq.s32.totalorder %v48_v60, %v1614_v11 }
  0x46   :  { %v464_v19 = vand.u32 4294901760, %v463_v61  ;;  %vm84_vm13 = vcmp.eq.s32.totalorder %v49_v0, %v1614_v11  ;;  %v117_v20 = vsel %vm83_vm12, %v1623_v17, 0.0  ;;  %vm150_vm14 = vcmp.eq.s32.totalorder %v48_v60, %v1626_v18 }
  0x47   :  { %1317 = vmatprep.subr.bf16.mxu0 %v1762_v10  ;;  %v118_v22 = vsel %vm84_vm13, %v1623_v17, 0.0  ;;  %vm151_vm15 = vcmp.eq.s32.totalorder %v49_v0, %v1626_v18  ;;  %v184_v23 = vsel %vm150_vm14, %v1630_v21, %v117_v20  ;;  %v344_v24 = vsub.f32 %v1686_v55, %v2205_v1 }
  0x48   :  { %v1340_v26 = vpack.c.bf16 %v464_v19, %v457_v59  ;;  %v185_v27 = vsel %vm151_vm15, %v1630_v21, %v118_v22  ;;  %v233_v28 = vand.u32 4294901760, %v184_v23  ;;  %v351_v29 = vsub.f32 %v1693_v58, %v2204_v6 }
  0x49   :  { %v236_v30 = vand.u32 4294901760, %v185_v27  ;;  %v345_v32 = vand.u32 4294901760, %v344_v24  ;;  %v66_v33 = vadd.s32 192, %v1603_v5  ;;  %v67_v38 = vadd.s32 200, %v1603_v5 }
  0x4a   :  { %1341 = vmatprep.subr.bf16.mxu1 %v1340_v26  ;;  %v1785_v42 = vsub.f32 %v184_v23, %v233_v28  ;;  %v352_v43 = vand.u32 4294901760, %v351_v29  ;;  %v2203_v44 = vand.u32 4294901760, %v1702_v2  ;;  %v2201_v48 = vand.u32 4294901760, %v1714_v14 }
  0x4b   :  { %v1789_v49 = vpack.c.bf16 %v236_v30, %v233_v28  ;;  %v1791_v50 = vsub.f32 %v185_v27, %v236_v30  ;;  %vm101_vm0 = vcmp.eq.s32.totalorder %v66_v33, %v1614_v11  ;;  %vm102_vm1 = vcmp.eq.s32.totalorder %v67_v38, %v1614_v11 }
  0x4c   :  { %v1342_v51 = vpack.c.bf16 %v352_v43, %v345_v32  ;;  %v135_v53 = vsel %vm101_vm0, %v1623_v17, 0.0  ;;  %v136_v56 = vsel %vm102_vm1, %v1623_v17, 0.0  ;;  %vm168_vm2 = vcmp.eq.s32.totalorder %v66_v33, %v1626_v18 }
  0x4d   :  { %1319 = vmatpush3.bf16.msra.mxu0 %v1789_v49  ;;  %vm169_vm3 = vcmp.eq.s32.totalorder %v67_v38, %v1626_v18  ;;  %v202_v59 = vsel %vm168_vm2, %v1630_v21, %v135_v53  ;;  %v470_v60 = vsub.f32 %v1702_v2, %v2203_v44  ;;  %v477_v61 = vsub.f32 %v1714_v14, %v2201_v48 }
  0x4e   :  { %1343 = vmatpush3.bf16.msra.mxu1 %v1342_v51  ;;  %v203_v0 = vsel %vm169_vm3, %v1630_v21, %v136_v56  ;;  %v287_v19 = vand.u32 4294901760, %v202_v59  ;;  %v50_v20 = vadd.s32 64, %v1603_v5  ;;  %v51_v22 = vadd.s32 72, %v1603_v5 }
  0x4f   :  { %v290_v23 = vand.u32 4294901760, %v203_v0  ;;  %v471_v24 = vand.u32 4294901760, %v470_v60  ;;  %v478_v26 = vand.u32 4294901760, %v477_v61  ;;  %v2199_v27 = vand.u32 4294901760, %v1738_v40 }
  0x50   :  { %v1811_v28 = vsub.f32 %v202_v59, %v287_v19  ;;  %vm85_vm4 = vcmp.eq.s32.totalorder %v50_v20, %v1614_v11  ;;  %vm86_vm5 = vcmp.eq.s32.totalorder %v51_v22, %v1614_v11  ;;  %vm152_vm6 = vcmp.eq.s32.totalorder %v50_v20, %v1626_v18 }
  0x51   :  { %v1816_v29 = vpack.c.bf16 %v290_v23, %v287_v19  ;;  %v1818_v30 = vsub.f32 %v203_v0, %v290_v23  ;;  %v1344_v32 = vpack.c.bf16 %v478_v26, %v471_v24  ;;  %v119_v33 = vsel %vm85_vm4, %v1623_v17, 0.0 }
  0x52   :  { %v120_v38 = vsel %vm86_vm5, %v1623_v17, 0.0  ;;  %vm153_vm7 = vcmp.eq.s32.totalorder %v51_v22, %v1626_v18  ;;  %v186_v43 = vsel %vm152_vm6, %v1630_v21, %v119_v33  ;;  %v358_v51 = vsub.f32 %v1738_v40, %v2199_v27 }
  0x53   :  { %1321 = vmatprep.subr.bf16.mxu0 %v1816_v29  ;;  %1345 = vmatprep.subr.bf16.mxu1 %v1344_v32  ;;  %v187_v53 = vsel %vm153_vm7, %v1630_v21, %v120_v38  ;;  %v239_v56 = vand.u32 4294901760, %v186_v43  ;;  %v2198_v59 = vand.u32 4294901760, %v1740_v41  ;;  %v68_v60 = vadd.s32 208, %v1603_v5 }
  0x54   :  { %v242_v61 = vand.u32 4294901760, %v187_v53  ;;  %v359_v0 = vand.u32 4294901760, %v358_v51  ;;  %v69_v19 = vadd.s32 216, %v1603_v5  ;;  %v2195_v20 = vand.u32 4294901760, %v1764_v15 }
  0x55   :  { %v1833_v22 = vsub.f32 %v186_v43, %v239_v56  ;;  %v365_v23 = vsub.f32 %v1740_v41, %v2198_v59  ;;  %vm103_vm8 = vcmp.eq.s32.totalorder %v68_v60, %v1614_v11  ;;  %vm170_vm9 = vcmp.eq.s32.totalorder %v68_v60, %v1626_v18 }
  0x56   :  { %v1840_v24 = vpack.c.bf16 %v242_v61, %v239_v56  ;;  %v1842_v26 = vsub.f32 %v187_v53, %v242_v61  ;;  %vm104_vm10 = vcmp.eq.s32.totalorder %v69_v19, %v1614_v11  ;;  %v137_v32 = vsel %vm103_vm8, %v1623_v17, 0.0 }
  0x57   :  { %v366_v33 = vand.u32 4294901760, %v365_v23  ;;  %v138_v38 = vsel %vm104_vm10, %v1623_v17, 0.0  ;;  %vm171_vm11 = vcmp.eq.s32.totalorder %v69_v19, %v1626_v18  ;;  %v204_v43 = vsel %vm170_vm9, %v1630_v21, %v137_v32 }
  0x58   :  { %1323 = vmatpush3.bf16.msra.mxu0 %v1840_v24  ;;  %v205_v51 = vsel %vm171_vm11, %v1630_v21, %v138_v38  ;;  %v293_v60 = vand.u32 4294901760, %v204_v43  ;;  %v484_v53 = vsub.f32 %v1764_v15, %v2195_v20  ;;  %v2194_v56 = vand.u32 4294901760, %v1766_v16 }
  0x59   :  { %v1346_v61 = vpack.c.bf16 %v366_v33, %v359_v0  ;;  %v296_v52 = vand.u32 4294901760, %v205_v51  ;;  %v52_v23 = vadd.s32 80, %v1603_v5  ;;  %v53_v34 = vadd.s32 88, %v1603_v5 }
  0x5a   :  { %v1857_v19 = vsub.f32 %v204_v43, %v293_v60  ;;  %v485_v32 = vand.u32 4294901760, %v484_v53  ;;  %v491_v38 = vsub.f32 %v1766_v16, %v2194_v56  ;;  %v2197_v25 = vand.u32 4294901760, %v1785_v42 }
  0x5b   :  { %1347 = vmatpush3.bf16.msra.mxu1 %v1346_v61  ;;  %v1863_v9 = vpack.c.bf16 %v296_v52, %v293_v60  ;;  %v1865_v12 = vsub.f32 %v205_v51, %v296_v52  ;;  %vm87_vm12 = vcmp.eq.s32.totalorder %v52_v23, %v1614_v11  ;;  %vm88_vm13 = vcmp.eq.s32.totalorder %v53_v34, %v1614_v11 }
  0x5c   :  { %v492_v0 = vand.u32 4294901760, %v491_v38  ;;  %v121_v33 = vsel %vm87_vm12, %v1623_v17, 0.0  ;;  %v122_v43 = vsel %vm88_vm13, %v1623_v17, 0.0  ;;  %vm154_vm14 = vcmp.eq.s32.totalorder %v52_v23, %v1626_v18 }
  0x5d   :  { %1325 = vmatprep.subr.bf16.mxu0 %v1863_v9  ;;  %vm155_vm15 = vcmp.eq.s32.totalorder %v53_v34, %v1626_v18  ;;  %v188_v60 = vsel %vm154_vm14, %v1630_v21, %v121_v33  ;;  %v372_v52 = vsub.f32 %v1785_v42, %v2197_v25  ;;  %v2196_v51 = vand.u32 4294901760, %v1791_v50 }
  0x5e   :  { %v1348_v53 = vpack.c.bf16 %v492_v0, %v485_v32  ;;  %v189_v61 = vsel %vm155_vm15, %v1630_v21, %v122_v43  ;;  %v245_v38 = vand.u32 4294901760, %v188_v60  ;;  %v70_v62 = vadd.s32 224, %v1603_v5 }
  0x5f   :  { %v248_v56 = vand.u32 4294901760, %v189_v61  ;;  %v373_v23 = vand.u32 4294901760, %v372_v52  ;;  %v379_v34 = vsub.f32 %v1791_v50, %v2196_v51  ;;  %v71_v33 = vadd.s32 232, %v1603_v5 }
  0x60   :  { %1349 = vmatprep.subr.bf16.mxu1 %v1348_v53  ;;  %v1885_v20 = vsub.f32 %v188_v60, %v245_v38  ;;  %vm105_vm0 = vcmp.eq.s32.totalorder %v70_v62, %v1614_v11  ;;  %vm172_vm1 = vcmp.eq.s32.totalorder %v70_v62, %v1626_v18  ;;  %v2200_v32 = vand.u32 4294901760, %v1811_v28 }
  0x61   :  { %v1890_v0 = vpack.c.bf16 %v248_v56, %v245_v38  ;;  %v1892_v43 = vsub.f32 %v189_v61, %v248_v56  ;;  %v380_v52 = vand.u32 4294901760, %v379_v34  ;;  %vm106_vm2 = vcmp.eq.s32.totalorder %v71_v33, %v1614_v11 }
  0x62   :  { %v139_v51 = vsel %vm105_vm0, %v1623_v17, 0.0  ;;  %v140_v25 = vsel %vm106_vm2, %v1623_v17, 0.0  ;;  %vm173_vm3 = vcmp.eq.s32.totalorder %v71_v33, %v1626_v18  ;;  %v498_v60 = vsub.f32 %v1811_v28, %v2200_v32 }
  0x63   :  { %1327 = vmatpush3.bf16.msra.mxu0 %v1890_v0  ;;  %v1350_v62 = vpack.c.bf16 %v380_v52, %v373_v23  ;;  %v206_v53 = vsel %vm172_vm1, %v1630_v21, %v139_v51  ;;  %v207_v56 = vsel %vm173_vm3, %v1630_v21, %v140_v25  ;;  %v2202_v61 = vand.u32 4294901760, %v1818_v30 }
  0x64   :  { %v299_v38 = vand.u32 4294901760, %v206_v53  ;;  %v302_v34 = vand.u32 4294901760, %v207_v56  ;;  %v499_v59 = vand.u32 4294901760, %v498_v60  ;;  %v54_v27 = vadd.s32 96, %v1603_v5 }
  0x65   :  { %1351 = vmatpush3.bf16.msra.mxu1 %v1350_v62  ;;  %v505_v33 = vsub.f32 %v1818_v30, %v2202_v61  ;;  %v55_v32 = vadd.s32 104, %v1603_v5  ;;  %v2208_v23 = vand.u32 4294901760, %v1833_v22  ;;  %v2209_v51 = vand.u32 4294901760, %v1842_v26 }
  0x66   :  { %v1912_v52 = vpack.c.bf16 %v302_v34, %v299_v38  ;;  %v1914_v25 = vsub.f32 %v206_v53, %v299_v38  ;;  %v1916_v48 = vsub.f32 %v207_v56, %v302_v34  ;;  %vm89_vm4 = vcmp.eq.s32.totalorder %v54_v27, %v1614_v11 }
  0x67   :  { %v506_v60 = vand.u32 4294901760, %v505_v33  ;;  %vm90_vm5 = vcmp.eq.s32.totalorder %v55_v32, %v1614_v11  ;;  %v123_v62 = vsel %vm89_vm4, %v1623_v17, 0.0  ;;  %vm156_vm6 = vcmp.eq.s32.totalorder %v54_v27, %v1626_v18 }
  0x68   :  { %2232 = vst [vmem:[#allocation13_spill] sm:$0xff] %v1912_v52  ;;  %1329 = vmatprep.subr.bf16.mxu0 %v1912_v52  ;;  %v124_v61 = vsel %vm90_vm5, %v1623_v17, 0.0  ;;  %vm157_vm7 = vcmp.eq.s32.totalorder %v55_v32, %v1626_v18  ;;  %v190_v53 = vsel %vm156_vm6, %v1630_v21, %v123_v62  ;;  %v386_v56 = vsub.f32 %v1833_v22, %v2208_v23 }
  0x69   :  { %v1352_v38 = vpack.c.bf16 %v506_v60, %v499_v59  ;;  %v191_v34 = vsel %vm157_vm7, %v1630_v21, %v124_v61  ;;  %v251_v33 = vand.u32 4294901760, %v190_v53  ;;  %v393_v27 = vsub.f32 %v1842_v26, %v2209_v51 }
  0x6a   :  { %v254_v44 = vand.u32 4294901760, %v191_v34  ;;  %v387_v6 = vand.u32 4294901760, %v386_v56  ;;  %v72_v1 = vadd.s32 240, %v1603_v5  ;;  %v73_v32 = vadd.s32 248, %v1603_v5 }
  0x6b   :  { %1353 = vmatprep.subr.bf16.mxu1 %v1352_v38  ;;  %v1935_v62 = vsub.f32 %v190_v53, %v251_v33  ;;  %v394_v3 = vand.u32 4294901760, %v393_v27  ;;  %v2217_v23 = vand.u32 4294901760, %v1857_v19  ;;  %v2214_v59 = vand.u32 4294901760, %v1865_v12 }
  0x6c   :  { %v1939_v61 = vpack.c.bf16 %v254_v44, %v251_v33  ;;  %v1941_v60 = vsub.f32 %v191_v34, %v254_v44  ;;  %vm107_vm8 = vcmp.eq.s32.totalorder %v72_v1, %v1614_v11  ;;  %vm108_vm9 = vcmp.eq.s32.totalorder %v73_v32, %v1614_v11 }
  0x6d   :  { %v1354_v56 = vpack.c.bf16 %v394_v3, %v387_v6  ;;  %v141_v51 = vsel %vm107_vm8, %v1623_v17, 0.0  ;;  %v142_v38 = vsel %vm108_vm9, %v1623_v17, 0.0  ;;  %vm174_vm10 = vcmp.eq.s32.totalorder %v72_v1, %v1626_v18 }
  0x6e   :  { %2233 = vst [vmem:[#allocation14_spill] sm:$0xff] %v1939_v61  ;;  %1331 = vmatpush3.bf16.msra.mxu0 %v1939_v61  ;;  %vm175_vm11 = vcmp.eq.s32.totalorder %v73_v32, %v1626_v18  ;;  %v208_v53 = vsel %vm174_vm10, %v1630_v21, %v141_v51  ;;  %v512_v44 = vsub.f32 %v1857_v19, %v2217_v23  ;;  %v56_v1 = vadd.s32 112, %v1603_v5 }
  0x6f   :  { %v519_v3 = vsub.f32 %v1865_v12, %v2214_v59  ;;  %1355 = vmatpush3.bf16.msra.mxu1 %v1354_v56  ;;  %v209_v6 = vsel %vm175_vm11, %v1630_v21, %v142_v38  ;;  %v305_v34 = vand.u32 4294901760, %v208_v53  ;;  %v57_v33 = vadd.s32 120, %v1603_v5 }
  0x70   :  { %v308_v27 = vand.u32 4294901760, %v209_v6  ;;  %v513_v32 = vand.u32 4294901760, %v512_v44  ;;  %v2216_v51 = vand.u32 4294901760, %v1885_v20  ;;  %vm91_vm12 = vcmp.eq.s32.totalorder %v56_v1, %v1614_v11 }
  0x71   :  { %v520_v61 = vand.u32 4294901760, %v519_v3  ;;  %v1961_v52 = vsub.f32 %v208_v53, %v305_v34  ;;  %vm92_vm13 = vcmp.eq.s32.totalorder %v57_v33, %v1614_v11  ;;  %vm158_vm14 = vcmp.eq.s32.totalorder %v56_v1, %v1626_v18 }
  0x72   :  { %v1966_v56 = vpack.c.bf16 %v308_v27, %v305_v34  ;;  %v1968_v38 = vsub.f32 %v209_v6, %v308_v27  ;;  %v125_v5 = vsel %vm91_vm12, %v1623_v17, 0.0  ;;  %v126_v44 = vsel %vm92_vm13, %v1623_v17, 0.0 }
  0x73   :  { %v1356_v59 = vpack.c.bf16 %v520_v61, %v513_v32  ;;  %vm159_vm15 = vcmp.eq.s32.totalorder %v57_v33, %v1626_v18  ;;  %v192_v53 = vsel %vm158_vm14, %v1630_v21, %v125_v5  ;;  %v400_v3 = vsub.f32 %v1885_v20, %v2216_v51 }
  0x74   :  { %2234 = vst [vmem:[#allocation15_spill] sm:$0xff] %v1966_v56  ;;  %1333 = vmatprep.subr.bf16.mxu0 %v1966_v56  ;;  %v193_v11 = vsel %vm159_vm15, %v1630_v21, %v126_v44  ;;  %v257_v6 = vand.u32 4294901760, %v192_v53  ;;  %v2215_v61 = vand.u32 4294901760, %v1892_v43  ;;  %v2218_v34 = vand.u32 4294901760, %v1606_v7 }
  0x75   :  { %1357 = vmatprep.subr.bf16.mxu1 %v1356_v59  ;;  %v260_v1 = vand.u32 4294901760, %v193_v11  ;;  %v401_v17 = vand.u32 4294901760, %v400_v3  ;;  %v2221_v18 = vand.u32 4294901760, %v1914_v25  ;;  %v2222_v33 = vand.u32 4294901760, %v1916_v48 }
  0x76   :  { %v1983_v27 = vsub.f32 %v192_v53, %v257_v6  ;;  %v407_v32 = vsub.f32 %v1892_v43, %v2215_v61  ;;  %v313_v21 = vsub.f32 %v1606_v7, %v2218_v34  ;;  %v1368_v59 = vpack.c.bf16 %v1698_v63, %v1684_v54 }
  0x77   :  { %v1993_v5 = vpack.c.bf16 %v260_v1, %v257_v6  ;;  %v1995_v44 = vsub.f32 %v193_v11, %v260_v1  ;;  %v526_v53 = vsub.f32 %v1914_v25, %v2221_v18  ;;  %v533_v3 = vsub.f32 %v1916_v48, %v2222_v33 }
  0x78   :  { %v408_v61 = vand.u32 4294901760, %v407_v32  ;;  %v314_v51 = vand.u32 4294901760, %v313_v21  ;;  %v2227_v23 = vand.u32 4294901760, %v1609_v8  ;;  %v2225_v34 = vand.u32 4294901760, %v1935_v62 }
  0x79   :  { %2235 = vst [vmem:[#allocation16_spill] sm:$0xff] %v1993_v5  ;;  %1335 = vmatpush3.bf16.msra.mxu0 %v1993_v5  ;;  %v527_v6 = vand.u32 4294901760, %v526_v53  ;;  %v534_v56 = vand.u32 4294901760, %v533_v3  ;;  %v2226_v11 = vand.u32 4294901760, %v1941_v60  ;;  %v1370_v1 = vpack.c.bf16 %v1660_v37, %v1652_v35 }
  0x7a   :  { %v1358_v18 = vpack.c.bf16 %v408_v61, %v401_v17  ;;  %315 = vmatprep.mubr.f32.mxu0 %v314_v51  ;;  %1369 = vmatprep.subr.bf16.mxu0 %v1368_v59  ;;  %v319_v32 = vsub.f32 %v1609_v8, %v2227_v23  ;;  %v414_v21 = vsub.f32 %v1935_v62, %v2225_v34  ;;  %v539_v33 = vand.u32 4294901760, %v1961_v52 }
  0x7b   :  { %v1360_v53 = vpack.c.bf16 %v534_v56, %v527_v6  ;;  %v421_v3 = vsub.f32 %v1941_v60, %v2226_v11  ;;  %v2228_v5 = vand.u32 4294901760, %v1968_v38  ;;  %v1372_v51 = vpack.c.bf16 %v1675_v47, %v1673_v46 }
  0x7c   :  { %1359 = vmatpush3.bf16.msra.mxu1 %v1358_v18  ;;  %v320_v61 = vand.u32 4294901760, %v319_v32  ;;  %v415_v17 = vand.u32 4294901760, %v414_v21  ;;  %v540_v59 = vsub.f32 %v1961_v52, %v539_v33  ;;  %v2229_v34 = vand.u32 4294901760, %v1983_v27 }
  0x7d   :  { %1361 = vmatprep.subr.bf16.mxu1 %v1360_v53  ;;  %v422_v56 = vand.u32 4294901760, %v421_v3  ;;  %v547_v6 = vsub.f32 %v1968_v38, %v2228_v5  ;;  %v2230_v11 = vand.u32 4294901760, %v1995_v44  ;;  %v1374_v3 = vpack.c.bf16 %v1693_v58, %v1686_v55 }
  0x7e   :  { %321 = vmatmul.mubr.f32.vlgmr.msra.gmra.mrb[0].mxu0 %v320_v61  ;;  %v541_v23 = vand.u32 4294901760, %v540_v59  ;;  %v428_v18 = vsub.f32 %v1983_v27, %v2229_v34  ;;  %v1376_v61 = vpack.c.bf16 %v1714_v14, %v1702_v2 }
  0x7f   :  { %v1362_v32 = vpack.c.bf16 %v422_v56, %v415_v17  ;;  %1371 = vmatpush3.bf16.msra.mxu0 %v1370_v1  ;;  %v548_v21 = vand.u32 4294901760, %v547_v6  ;;  %v435_v53 = vsub.f32 %v1995_v44, %v2230_v11  ;;  %688 = vmatprep.mubr.f32.mxu0 %v1606_v7  ;;  %v1378_v17 = vpack.c.bf16 %v1740_v41, %v1738_v40 }
  0x80   :  { %1373 = vmatprep.subr.bf16.mxu0 %v1372_v51  ;;  %v429_v5 = vand.u32 4294901760, %v428_v18  ;;  %v1380_v56 = vpack.c.bf16 %v1766_v16, %v1764_v15  ;;  %v2236_v6 = vand.u32 4294901760, %v1686_v55  ;;  %v2237_v51 = vand.u32 4294901760, %v1693_v58 }
  0x81   :  { %1363 = vmatpush3.bf16.msra.mxu1 %v1362_v32  ;;  %v1364_v59 = vpack.c.bf16 %v548_v21, %v541_v23  ;;  %v436_v34 = vand.u32 4294901760, %v435_v53  ;;  %v2238_v11 = vand.u32 4294901760, %v1702_v2  ;;  %v2239_v23 = vand.u32 4294901760, %v1714_v14 }
  0x82   :  { %v1438_v18 = vpack.c.bf16 %v2237_v51, %v2236_v6  ;;  %v2242_v53 = vand.u32 4294901760, %v1764_v15  ;;  %v2244_v55 = vand.u32 4294901760, %v1785_v42  ;;  %v2245_v58 = vand.u32 4294901760, %v1791_v50 }
  0x83   :  { %1365 = vmatprep.subr.bf16.mxu1 %v1364_v59  ;;  %v1366_v1 = vpack.c.bf16 %v436_v34, %v429_v5  ;;  %1375 = vmatpush3.bf16.msra.mxu0 %v1374_v3  ;;  %v1440_v32 = vpack.c.bf16 %v2239_v23, %v2238_v11  ;;  %v2240_v34 = vand.u32 4294901760, %v1738_v40  ;;  %v2241_v5 = vand.u32 4294901760, %v1740_v41 }
  0x84   :  { %1377 = vmatprep.subr.bf16.mxu0 %v1376_v61  ;;  %v2243_v3 = vand.u32 4294901760, %v1766_v16  ;;  %v1446_v59 = vpack.c.bf16 %v2245_v58, %v2244_v55  ;;  %v2246_v2 = vand.u32 4294901760, %v1811_v28  ;;  %v2247_v14 = vand.u32 4294901760, %v1818_v30 }
  0x85   :  { %v1442_v21 = vpack.c.bf16 %v2241_v5, %v2240_v34  ;;  %1367 = vmatpush3.bf16.msra.mxu1 %v1366_v1  ;;  %v2248_v40 = vand.u32 4294901760, %v1833_v22  ;;  %v2249_v41 = vand.u32 4294901760, %v1842_v26  ;;  %v2250_v15 = vand.u32 4294901760, %v1857_v19 }
  0x86   :  { %v1444_v61 = vpack.c.bf16 %v2243_v3, %v2242_v53  ;;  %v1448_v11 = vpack.c.bf16 %v2247_v14, %v2246_v2  ;;  %1401 = vmatprep.subr.bf16.mxu1 %v1648_v31  ;;  %v2251_v16 = vand.u32 4294901760, %v1865_v12  ;;  %v1382_v51 = vpack.c.bf16 %v1791_v50, %v1785_v42 }
  0x87   :  { %v1450_v1 = vpack.c.bf16 %v2249_v41, %v2248_v40  ;;  %1379 = vmatpush3.bf16.msra.mxu0 %v1378_v17  ;;  %v1384_v23 = vpack.c.bf16 %v1818_v30, %v1811_v28  ;;  %v2252_v34 = vand.u32 4294901760, %v1606_v7  ;;  %v1386_v17 = vpack.c.bf16 %v1842_v26, %v1833_v22 }
  0x88   :  { %v1452_v6 = vpack.c.bf16 %v2251_v16, %v2250_v15  ;;  %553 = vmatmul.mubr.f32.vlgmr.msra.gmra.mrb[0].mxu1 %v1601_v4  ;;  %1381 = vmatprep.subr.bf16.mxu0 %v1380_v56  ;;  %v1388_v42 = vpack.c.bf16 %v1865_v12, %v1857_v19  ;;  %v1390_v50 = vpack.c.bf16 %v1892_v43, %v1885_v20  ;;  %v2253_v22 = vand.u32 4294901760, %v1684_v54  ;;  %v2259_v54 = vld [vmem:[#allocation13_spill] sm:$0xff] }
  0x89   :  { %1403 = vmatpush3.bf16.msra.mxu1 %v1658_v36  ;;  %795 = vmatprep.mubr.f32.mxu1 %v2252_v34  ;;  %v1392_v7 = vpack.c.bf16 %v1916_v48, %v1914_v25  ;;  %v1394_v12 = vpack.c.bf16 %v1941_v60, %v1935_v62  ;;  %v1396_v28 = vpack.c.bf16 %v1968_v38, %v1961_v52  ;;  %v2254_v26 = vand.u32 4294901760, %v1698_v63  ;;  %v2260_v63 = vld [vmem:[#allocation12_spill] sm:$0xff] }
  0x8a   :  { %1405 = vmatprep.subr.bf16.mxu1 %v1671_v45  ;;  %v1398_v30 = vpack.c.bf16 %v1995_v44, %v1983_v27  ;;  %v2255_v56 = vand.u32 4294901760, %v1652_v35  ;;  %v2256_v5 = vand.u32 4294901760, %v1660_v37  ;;  %v2257_v3 = vand.u32 4294901760, %v1673_v46  ;;  %v2261_v35 = vld [vmem:[#allocation14_spill] sm:$0xff]  ;;  %v2262_v37 = vld [vmem:[#allocation15_spill] sm:$0xff]  ;;  %v2263_v46 = vld [vmem:[#allocation16_spill] sm:$0xff] }
  0x8b   :  { %1383 = vmatpush3.bf16.msra.mxu0 %v1382_v51  ;;  %v1432_v19 = vpack.c.bf16 %v2254_v26, %v2253_v22  ;;  %v2258_v55 = vand.u32 4294901760, %v1675_v47  ;;  %v2264_v47 = vand.u32 4294901760, %v1609_v8 }
  0x8c   :  { %1385 = vmatprep.subr.bf16.mxu0 %v1384_v23  ;;  %v1434_v53 = vpack.c.bf16 %v2256_v5, %v2255_v56 }
  0x8d   :  { %1407 = vmatpush3.bf16.msra.mxu1 %v1691_v57  ;;  %v1436_v58 = vpack.c.bf16 %v2258_v55, %v2257_v3 }
  0x8e   :  { %1409 = vmatprep.subr.bf16.mxu1 %v1712_v13 }
  0x8f   :  { %1387 = vmatpush3.bf16.msra.mxu0 %v1386_v17 }
  0x90   :  { %1389 = vmatprep.subr.bf16.mxu0 %v1388_v42 }
  0x91   :  { %1411 = vmatpush3.bf16.msra.mxu1 %v1736_v39 }
  0x92   :  { %1413 = vmatprep.subr.bf16.mxu1 %v1762_v10 }
  0x93   :  { %1391 = vmatpush3.bf16.msra.mxu0 %v1390_v50 }
  0x94   :  { %1393 = vmatprep.subr.bf16.mxu0 %v1392_v7 }
  0x95   :  { %1415 = vmatpush3.bf16.msra.mxu1 %v1789_v49 }
  0x96   :  { %1417 = vmatprep.subr.bf16.mxu1 %v1816_v29 }
  0x97   :  { %1395 = vmatpush3.bf16.msra.mxu0 %v1394_v12 }
  0x98   :  { %1397 = vmatprep.subr.bf16.mxu0 %v1396_v28 }
  0x99   :  { %1419 = vmatpush3.bf16.msra.mxu1 %v1840_v24 }
  0x9a   :  { %1421 = vmatprep.subr.bf16.mxu1 %v1863_v9 }
  0x9b   :  { %1399 = vmatpush3.bf16.msra.mxu0 %v1398_v30 }
  0x9c   :  { %1433 = vmatprep.subr.bf16.mxu0 %v1432_v19 }
  0x9d   :  { %1423 = vmatpush3.bf16.msra.mxu1 %v1890_v0 }
  0x9e   :  { %691 = vmatmul.mubr.f32.vlgmr.msra.gmra.mrb[2].mxu0 %v1609_v8  ;;  %1425 = vmatprep.subr.bf16.mxu1 %v2259_v54 }
  0x9f   :  { %1435 = vmatpush3.bf16.msra.mxu0 %v1434_v53  ;;  %965 = vmatprep.mubr.f32.mxu0 %v2260_v63 }
  0xa0   :  { %1437 = vmatprep.subr.bf16.mxu0 %v1436_v58 }
  0xa1   :  { %1427 = vmatpush3.bf16.msra.mxu1 %v2261_v35 }
  0xa2   :  { %1429 = vmatprep.subr.bf16.mxu1 %v2262_v37 }
  0xa3   :  { %1439 = vmatpush3.bf16.msra.mxu0 %v1438_v18  ;;  %v2266_v18 = vand.u32 4294901760, %v1892_v43 }
  0xa4   :  { %1441 = vmatprep.subr.bf16.mxu0 %v1440_v32  ;;  %v2267_v32 = vand.u32 4294901760, %v1914_v25 }
  0xa5   :  { %1431 = vmatpush3.bf16.msra.mxu1 %v2263_v46 }
  0xa6   :  { %1465 = vmatprep.subr.bf16.mxu1 %v1648_v31  ;;  %v2265_v31 = vand.u32 4294901760, %v1885_v20  ;;  %v2271_v20 = vand.u32 4294901760, %v1968_v38 }
  0xa7   :  { %1443 = vmatpush3.bf16.msra.mxu0 %v1442_v21 }
  0xa8   :  { %799 = vmatmul.mubr.f32.vlgmr.msra.gmra.mrb[2].mxu1 %v2264_v47  ;;  %1445 = vmatprep.subr.bf16.mxu0 %v1444_v61  ;;  %v1454_v8 = vpack.c.bf16 %v2266_v18, %v2265_v31  ;;  %v1460_v43 = vpack.c.bf16 %v2271_v20, %v539_v33 }
  0xa9   :  { %1467 = vmatpush3.bf16.msra.mxu1 %v1658_v36  ;;  %1069 = vmatprep.mubr.f32.mxu1 %v2260_v63  ;;  %v2268_v36 = vand.u32 4294901760, %v1916_v48 }
  0xaa   :  { %1469 = vmatprep.subr.bf16.mxu1 %v1671_v45  ;;  %v2269_v45 = vand.u32 4294901760, %v1935_v62 }
  0xab   :  { %1447 = vmatpush3.bf16.msra.mxu0 %v1446_v59  ;;  %v1456_v21 = vpack.c.bf16 %v2268_v36, %v2267_v32 }
  0xac   :  { %1449 = vmatprep.subr.bf16.mxu0 %v1448_v11 }
  0xad   :  { %1471 = vmatpush3.bf16.msra.mxu1 %v1691_v57  ;;  %v2270_v57 = vand.u32 4294901760, %v1941_v60 }
  0xae   :  { %1473 = vmatprep.subr.bf16.mxu1 %v1712_v13 }
  0xaf   :  { %1451 = vmatpush3.bf16.msra.mxu0 %v1450_v1  ;;  %v1458_v13 = vpack.c.bf16 %v2270_v57, %v2269_v45 }
  0xb0   :  { %1453 = vmatprep.subr.bf16.mxu0 %v1452_v6 }
  0xb1   :  { %1475 = vmatpush3.bf16.msra.mxu1 %v1736_v39  ;;  %v2272_v39 = vand.u32 4294901760, %v1983_v27 }
  0xb2   :  { %1477 = vmatprep.subr.bf16.mxu1 %v1762_v10  ;;  %v2273_v10 = vand.u32 4294901760, %v1995_v44 }
  0xb3   :  { %1455 = vmatpush3.bf16.msra.mxu0 %v1454_v8 }
  0xb4   :  { %1457 = vmatprep.subr.bf16.mxu0 %v1456_v21  ;;  %v1462_v48 = vpack.c.bf16 %v2273_v10, %v2272_v39 }
  0xb5   :  { %1479 = vmatpush3.bf16.msra.mxu1 %v1789_v49 }
  0xb6   :  { %1481 = vmatprep.subr.bf16.mxu1 %v1816_v29 }
  0xb7   :  { %1459 = vmatpush3.bf16.msra.mxu0 %v1458_v13 }
  0xb8   :  { %1461 = vmatprep.subr.bf16.mxu0 %v1460_v43 }
  0xb9   :  { %1483 = vmatpush3.bf16.msra.mxu1 %v1840_v24 }
  0xba   :  { %1485 = vmatprep.subr.bf16.mxu1 %v1863_v9  ;;  %v213_v9 = vstv %s2186_s2  ;;  %s1563_s2 = smov [#allocation8]  }
  0xbb   :  { %1463 = vmatpush3.bf16.msra.mxu0 %v1462_v48  ;;  %s1083_s4 = sshll.u32 %s1563_s2, 4  ;;  %s1084_s4 = int_to_ptr.vmem [resolvable:$true] %s1083_s4 }
  0xbc   :  { %s1533_s5 = scalar_lea.vmem %s1084_s4, 128  ;;  %p1538_p0 = scmp.lt.s32.totalorder %s1084_s4, %s1084_s4 }
  0xbd   :  { %1487 = vmatpush3.bf16.msra.mxu1 %v1890_v0  ;;  %p1534_p13 = scmp.ne.s32.totalorder %s1084_s4, %s1533_s5  ;;  %p1539_p1 = scmp.lt.s32.totalorder %s1533_s5, %s1533_s5 }
  0xbe   :  { %967 = vmatmul.mubr.f32.vlgmr.msra.gmra.mrb[4].mxu0 %v1601_v4  ;;  %1489 = vmatprep.subr.bf16.mxu1 %v2259_v54 }
  0xbf   :  { %p1540_p2 = por %p1539_p1, %p1538_p0 }
  0xc1   :  { %1491 = vmatpush3.bf16.msra.mxu1 %v2261_v35  ;;  %p1541_p3 = pnand %p1540_p2, %p1534_p13 }
  0xc2   :  { %1493 = vmatprep.subr.bf16.mxu1 %v2262_v37 }
  0xc5   :  { %1495 = vmatpush3.bf16.msra.mxu1 %v2263_v46 }
  0xc8   :  { %1071 = vmatmul.mubr.f32.vlgmr.msra.gmra.mrb[4].mxu1 %v1601_v4 }
 0x151   :  { %v1126_v49 = vpop.f32.mrb[0].mxu0 }
 0x152   :  { %v1127_v29 = vpop.f32.mrb[1].mxu0 }
 0x153   :  { %v1128_v24 = vadd.f32 %v1127_v29, %v1126_v49 }
 0x155   :  { %v323_v0 = vadd.f32 %v1128_v24, %v213_v9 }
 0x15b   :  { %v1161_v52 = vpop.f32.mrb[0].mxu1 }
 0x15c   :  { %v1162_v25 = vpop.f32.mrb[1].mxu1 }
 0x15d   :  { %v1163_v62 = vadd.f32 %v1162_v25, %v1161_v52 }
 0x15f   :  { %v555_v60 = vadd.f32 %v1163_v62, %v323_v0 }
 0x171   :  { %v1196_v38 = vpop.f32.mrb[2].mxu0 }
 0x172   :  { %v1197_v33 = vpop.f32.mrb[3].mxu0 }
 0x173   :  { %v1198_v27 = vadd.f32 %v1197_v33, %v1196_v38 }
 0x175   :  { %v693_v44 = vadd.f32 %v1198_v27, %v555_v60 }
 0x17b   :  { %v1231_v61 = vpop.f32.mrb[2].mxu1 }
 0x17c   :  { %v1232_v59 = vpop.f32.mrb[3].mxu1 }
 0x17d   :  { %v1233_v2 = vadd.f32 %v1232_v59, %v1231_v61 }
 0x17f   :  { %v801_v4 = vadd.f32 %v1233_v2, %v693_v44 }
 0x191   :  { %v1266_v14 = vpop.f32.mrb[4].mxu0 }
 0x192   :  { %v1267_v11 = vpop.f32.mrb[5].mxu0 }
 0x193   :  { %v1268_v40 = vadd.f32 %v1267_v11, %v1266_v14 }
 0x195   :  { %v969_v41 = vadd.f32 %v1268_v40, %v801_v4 }
 0x19b   :  { %v1301_v1 = vpop.f32.mrb[4].mxu1 }
 0x19c   :  { %v1302_v15 = vpop.f32.mrb[5].mxu1 }
 0x19d   :  { %v1303_v16 = vadd.f32 %v1302_v15, %v1301_v1 }
 0x19f   :  { %v1073_v6 = vadd.f32 %v1303_v16, %v969_v41 }
 0x1a1   :  { %1076 = vst [vmem:[#allocation8] sm:$0xff] %v1073_v6 }
 0x1a2   :  { %1544 = shalt.err (!%p1541_p3)
}
 0x1a3   :  { %s1545_s8 = scalar_lea.hbm %s2187_s3, 128 }
 0x1a4   :  { %p1546_p4 = scmp.ne.s32.totalorder %s2187_s3, %s1545_s8  ;;  %p1549_p5 = scmp.lt.u32.totalorder %s1545_s8, %s2187_s3 }
 0x1a6   :  { %p1551_p6 = pnand %p1549_p5, %p1546_p4 }
 0x1a8   :  { %1554 = shalt.err (!%p1551_p6)
}
 0x1a9   :  { %1086 = dma.vmem_to_hbm [thread:$0]  %s1084_s4, 128, %s2187_s3, [#allocation5]  }
 0x1aa   :  { %1559 = dma.done.wait [#allocation5], 128  }
 0x1ab   :  { %1560 = vsyncadd [#allocation5], 4294967168 }
 0x1ac   :  { %1090 = vsyncpa [#allocation4], 1 }
 0x1ad   :  { %1091 = vsyncpa [#allocation5], 1 }
 0x1ae   :  { %1092 = vsyncpa [#allocation6], 1 }

</bundles_post_ra>
